<compile_context>
chip_gen: v7x
topology: tpu7x:2x2x1
jax: 0.10.0
libtpu: 0.0.40
codegen_flags: <defaults>
</compile_context>

<pallas_src>
import functools

import jax
import jax.numpy as jnp
from jax.experimental import pallas as pl
from jax.experimental.pallas import tpu as pltpu


def _round_up(x, m):
    return (x + m - 1) // m * m


def _quantize_symmetric(t):
    """Per-tensor symmetric int8 quantization (mirrors quantize_symmetric_cuda(t, 8))."""
    max_abs = jnp.maximum(jnp.max(jnp.abs(t)), 1e-12)   # guard all-zero tensors
    scale = max_abs / 127.0
    q = jnp.clip(jnp.round(t * (127.0 / max_abs)), -127.0, 127.0)
    return q, scale


def prepare_quantized_weight(weight, bias):
    """__init__-time parameter prep: quantize + transpose the weight ONCE."""
    w_q, w_scale = _quantize_symmetric(weight)              # weight: (N, K) f32
    w_q_t = jnp.transpose(w_q.astype(jnp.int8), (1, 0))     # (K, N) int8
    if bias is None:
        bias = jnp.zeros((weight.shape[0],), jnp.float32)
    return w_q_t, w_scale.astype(jnp.float32), bias.astype(jnp.float32)


def _matmul_dtypes():
    """Pick the fastest native MXU path for the local chip."""
    try:
        kind = jax.devices()[0].device_kind.lower()
    except Exception:
        kind = ""
    if "v7" in kind or "7x" in kind:
        # v7x MXU has no integer path: bf16 is exact for integer values <= 127.
        return jnp.bfloat16, jnp.float32
    # v5e / v6e: native int8 MXU with exact int32 accumulation.
    return jnp.int8, jnp.int32


def _qlinear_kernel(scales_ref, x_ref, wq_ref, bias_ref, o_ref, acc_ref,
                    *, compute_dtype):
    # scales_ref: (1, 2) f32 SMEM   [127/max|x|, x_scale*w_scale]
    # x_ref:      (tm, tk) f32 VMEM — raw activation tile
    # wq_ref:     (tk, tn) int8 VMEM — pre-quantized, pre-transposed weight tile
    # bias_ref:   (1, tn) f32 VMEM
    # o_ref:      (tm, tn) f32 VMEM
    # acc_ref:    (tm, tn) int32 (int8 path) or f32 (bf16 path) VMEM scratch
    k = pl.program_id(2)

    @pl.when(k == 0)
    def _():
        acc_ref[...] = jnp.zeros_like(acc_ref)

    # Dynamic activation quantization with the hoisted per-tensor scale
    # (multiply by precomputed reciprocal; no per-element divide).
    inv_x_scale = scales_ref[0, 0]
    x_q = jnp.clip(jnp.round(x_ref[...] * inv_x_scale),
                   -127.0, 127.0).astype(compute_dtype)
    w_q = wq_ref[...].astype(compute_dtype)   # no-op on the int8 path

    acc_ref[...] += jnp.dot(x_q, w_q, preferred_element_type=acc_ref.dtype)

    # Dequant + bias epilogue runs once per output tile (last K step only).
    @pl.when(k == pl.num_programs(2) - 1)
    def _():
        out_scale = scales_ref[0, 1]
        o_ref[...] = (acc_ref[...].astype(jnp.float32) * out_scale
                      + bias_ref[...]).astype(o_ref.dtype)


@jax.jit
def custom_quantized_linear(x, w_q_t, w_scale, bias):
    """x: (M, K) f32; w_q_t: (K, N) int8; w_scale: scalar f32; bias: (N,) f32."""
    M, K = x.shape
    Kw, N = w_q_t.shape
    assert Kw == K

    compute_dtype, acc_dtype = _matmul_dtypes()

    # Hoisted per-tensor activation scale (cheap mem-bound pre-pass handled by XLA).
    x_absmax = jnp.maximum(jnp.max(jnp.abs(x)), 1e-12)
    inv_x_scale = 127.0 / x_absmax
    out_scale = (x_absmax / 127.0) * w_scale
    scales = jnp.stack([inv_x_scale, out_scale]).reshape(1, 2).astype(jnp.float32)

    # MXU / layout aligned tiles (tn lane-dense multiple of 128, tk multiple of 32
    # for int8 sublane packing), shrunk to the padded problem when smaller.
    # Double-buffered working set stays well under the default scoped-VMEM limits
    # (16 MiB v5e / 32 MiB v6e,v7x) and v7x's 64 MiB physical VMEM.
    tm = min(256, _round_up(M, 8))
    tn = min(256, _round_up(N, 128))
    tk = min(512, _round_up(K, 32))
    M_pad, N_pad, K_pad = _round_up(M, tm), _round_up(N, tn), _round_up(K, tk)

    x_p = jnp.pad(x.astype(jnp.float32), ((0, M_pad - M), (0, K_pad - K)))
    w_p = jnp.pad(w_q_t, ((0, K_pad - K), (0, N_pad - N)))
    b_p = jnp.pad(bias.astype(jnp.float32).reshape(1, N), ((0, 0), (0, N_pad - N)))

    grid = (M_pad // tm, N_pad // tn, K_pad // tk)

    out = pl.pallas_call(
        functools.partial(_qlinear_kernel, compute_dtype=compute_dtype),
        out_shape=jax.ShapeDtypeStruct((M_pad, N_pad), jnp.float32),
        grid_spec=pltpu.PrefetchScalarGridSpec(
            num_scalar_prefetch=0,
            grid=grid,
            in_specs=[
                pl.BlockSpec(memory_space=pltpu.MemorySpace.SMEM),     # scales (1,2)
                pl.BlockSpec((tm, tk), lambda i, j, k: (i, k)),        # x tile (f32)
                pl.BlockSpec((tk, tn), lambda i, j, k: (k, j)),        # weight tile (int8)
                pl.BlockSpec((1, tn), lambda i, j, k: (0, j)),         # bias tile
            ],
            out_specs=pl.BlockSpec((tm, tn), lambda i, j, k: (i, j)),
            scratch_shapes=[pltpu.VMEM((tm, tn), acc_dtype)],
        ),
        compiler_params=pltpu.CompilerParams(
            dimension_semantics=("parallel", "parallel", "arbitrary"),
        ),
    )(scales, x_p, w_p, b_p)

    return out[:M, :N]


def reference(x, weight, bias):
    """Pure-JAX emulation of the torch forward pass for correctness checking."""
    w_q, w_scale = _quantize_symmetric(weight)
    x_q, x_scale = _quantize_symmetric(x)
    acc = jnp.dot(x_q, w_q.T, preferred_element_type=jnp.float32)
    return acc * (x_scale * w_scale) + bias[None, :]


def _run_case(key, M, K, N, atol, rtol):
    kx, kw, kb = jax.random.split(key, 3)
    x = jax.random.normal(kx, (M, K), dtype=jnp.float32)
    weight = jax.random.normal(kw, (N, K), dtype=jnp.float32) * 0.1  # nn.Linear weight
    bias = jax.random.normal(kb, (N,), dtype=jnp.float32) * 0.1

    w_q_t, w_scale, bias_f32 = prepare_quantized_weight(weight, bias)   # "__init__" time
    out = jax.block_until_ready(custom_quantized_linear(x, w_q_t, w_scale, bias_f32))

    ref = reference(x, weight, bias)
    assert out.shape == (M, N) and out.dtype == jnp.float32
    max_err = float(jnp.max(jnp.abs(out - ref)))
    assert jnp.allclose(out, ref, atol=atol, rtol=rtol), f"max abs err = {max_err}"


if __name__ == "__main__":
    key = jax.random.PRNGKey(0)
    k1, k2 = jax.random.split(key)
    # Small shapes consistent with the module: batch=8, in_features=32, out_features=16.
    _run_case(k1, M=8, K=32, N=16, atol=1e-4, rtol=1e-4)
    # Larger case exercising the M/N/K grid, K accumulation and N padding.
    _run_case(k2, M=64, K=1024, N=384, atol=1e-3, rtol=1e-3)
    print("KERNEL_OK")
</pallas_src>

<mosaic_0001>
module attributes {stable_mosaic.version = 11 : i64} {
  func.func @_qlinear_kernel(%arg0: i32, %arg1: i32, %arg2: i32, %arg3: memref<1x2xf32, #tpu.memory_space<smem>>, %arg4: memref<8x32xf32, #tpu.memory_space<vmem>>, %arg5: memref<32x128xi8, #tpu.memory_space<vmem>>, %arg6: memref<1x128xf32, #tpu.memory_space<vmem>>, %arg7: memref<8x128xf32, #tpu.memory_space<vmem>>, %arg8: memref<8x128xi32, #tpu.memory_space<vmem>>) attributes {dimension_semantics = [#tpu.dimension_semantics<parallel>, #tpu.dimension_semantics<parallel>, #tpu.dimension_semantics<arbitrary>], iteration_bounds = array<i64: 1, 1, 1>, scalar_prefetch = 0 : i64, scratch_operands = 1 : i64, tpu.core_type = #tpu.core_type<tc>, window_params = [{transform_indices = @transform_0, window_bounds = array<i64: 1, 2>}, {transform_indices = @transform_1, window_bounds = array<i64: 8, 32>}, {transform_indices = @transform_2, window_bounds = array<i64: 32, 128>}, {transform_indices = @transform_3, window_bounds = array<i64: 1, 128>}, {transform_indices = @transform_4, window_bounds = array<i64: 8, 128>}]} {
    %c0_i32 = arith.constant 0 : i32
    %0 = arith.cmpi eq, %arg2, %c0_i32 : i32
    %1 = arith.extui %0 : i1 to i32
    %c0_i32_0 = arith.constant 0 : i32
    %2 = arith.cmpi ne, %1, %c0_i32_0 : i32
    scf.if %2 {
      %c0_i32_14 = arith.constant 0 : i32
      %21 = vector.broadcast %c0_i32_14 : i32 to vector<8x128xi32>
      %c0_15 = arith.constant 0 : index
      %c0_16 = arith.constant 0 : index
      %22 = vector.load %arg8[%c0_15, %c0_16] : memref<8x128xi32, #tpu.memory_space<vmem>>, vector<8x128xi32>
      tpu.vector_store %arg8[%c0_15, %c0_16], %21 {strides = array<i32>} : memref<8x128xi32, #tpu.memory_space<vmem>>, vector<8x128xi32>,
    } else {
    }
    %c0 = arith.constant 0 : index
    %c0_1 = arith.constant 0 : index
    %3 = memref.load %arg3[%c0, %c0_1] : memref<1x2xf32, #tpu.memory_space<smem>>
    %c0_2 = arith.constant 0 : index
    %c0_3 = arith.constant 0 : index
    %4 = vector.load %arg4[%c0_2, %c0_3] : memref<8x32xf32, #tpu.memory_space<vmem>>, vector<8x32xf32>
    %5 = vector.broadcast %3 : f32 to vector<8x32xf32>
    %6 = arith.mulf %4, %5 : vector<8x32xf32>
    %7 = math.roundeven %6 : vector<8x32xf32>
    %cst = arith.constant -1.270000e+02 : f32
    %cst_4 = arith.constant 1.270000e+02 : f32
    %8 = vector.broadcast %cst : f32 to vector<8x32xf32>
    %9 = arith.maximumf %8, %7 : vector<8x32xf32>
    %10 = vector.broadcast %cst_4 : f32 to vector<8x32xf32>
    %11 = arith.minimumf %10, %9 : vector<8x32xf32>
    %12 = arith.fptosi %11 : vector<8x32xf32> to vector<8x32xi8>
    %c0_5 = arith.constant 0 : index
    %c0_6 = arith.constant 0 : index
    %13 = vector.load %arg5[%c0_5, %c0_6] : memref<32x128xi8, #tpu.memory_space<vmem>>, vector<32x128xi8>
    %c0_7 = arith.constant 0 : index
    %c0_8 = arith.constant 0 : index
    %14 = vector.load %arg8[%c0_7, %c0_8] : memref<8x128xi32, #tpu.memory_space<vmem>>, vector<8x128xi32>
    %cst_9 = arith.constant dense<0> : vector<8x128xi32>
    %15 = tpu.matmul %12, %13, %cst_9 {dimension_numbers = #tpu.dot_dimension_numbers<[1], [0], [0], [1], [0, 0, 1, 1], [], []>} : vector<8x32xi8>, vector<32x128xi8>, vector<8x128xi32> -> vector<8x128xi32>
    %16 = arith.addi %14, %15 : vector<8x128xi32>
    %c0_10 = arith.constant 0 : index
    %c0_11 = arith.constant 0 : index
    %17 = vector.load %arg8[%c0_10, %c0_11] : memref<8x128xi32, #tpu.memory_space<vmem>>, vector<8x128xi32>
    tpu.vector_store %arg8[%c0_10, %c0_11], %16 {strides = array<i32>} : memref<8x128xi32, #tpu.memory_space<vmem>>, vector<8x128xi32>,
    %c0_i32_12 = arith.constant 0 : i32
    %18 = arith.cmpi eq, %arg2, %c0_i32_12 : i32
    %19 = arith.extui %18 : i1 to i32
    %c0_i32_13 = arith.constant 0 : i32
    %20 = arith.cmpi ne, %19, %c0_i32_13 : i32
    scf.if %20 {
      %c0_14 = arith.constant 0 : index
      %c1 = arith.constant 1 : index
      %21 = memref.load %arg3[%c0_14, %c1] : memref<1x2xf32, #tpu.memory_space<smem>>
      %c0_15 = arith.constant 0 : index
      %c0_16 = arith.constant 0 : index
      %22 = vector.load %arg8[%c0_15, %c0_16] : memref<8x128xi32, #tpu.memory_space<vmem>>, vector<8x128xi32>
      %23 = arith.sitofp %22 : vector<8x128xi32> to vector<8x128xf32>
      %24 = vector.broadcast %21 : f32 to vector<8x128xf32>
      %25 = arith.mulf %23, %24 : vector<8x128xf32>
      %c0_17 = arith.constant 0 : index
      %c0_18 = arith.constant 0 : index
      %26 = vector.load %arg6[%c0_17, %c0_18] : memref<1x128xf32, #tpu.memory_space<vmem>>, vector<1x128xf32>
      %27 = vector.broadcast %26 : vector<1x128xf32> to vector<8x128xf32>
      %28 = arith.addf %25, %27 : vector<8x128xf32>
      %c0_19 = arith.constant 0 : index
      %c0_20 = arith.constant 0 : index
      %29 = vector.load %arg7[%c0_19, %c0_20] : memref<8x128xf32, #tpu.memory_space<vmem>>, vector<8x128xf32>
      tpu.vector_store %arg7[%c0_19, %c0_20], %28 {strides = array<i32>} : memref<8x128xf32, #tpu.memory_space<vmem>>, vector<8x128xf32>,
    } else {
    }
    return
  }
  func.func @transform_0(%arg0: i32, %arg1: i32, %arg2: i32) -> (i32, i32) {
    %c0_i32 = arith.constant 0 : i32
    %c0_i32_0 = arith.constant 0 : i32
    %c0_i32_1 = arith.constant 0 : i32
    return %c0_i32, %c0_i32_0 : i32, i32
  }
  func.func @transform_1(%arg0: i32, %arg1: i32, %arg2: i32) -> (i32, i32) {
    %c0_i32 = arith.constant 0 : i32
    return %arg0, %arg2 : i32, i32
  }
  func.func @transform_2(%arg0: i32, %arg1: i32, %arg2: i32) -> (i32, i32) {
    %c0_i32 = arith.constant 0 : i32
    return %arg2, %arg1 : i32, i32
  }
  func.func @transform_3(%arg0: i32, %arg1: i32, %arg2: i32) -> (i32, i32) {
    %c0_i32 = arith.constant 0 : i32
    %c0_i32_0 = arith.constant 0 : i32
    return %c0_i32, %arg1 : i32, i32
  }
  func.func @transform_4(%arg0: i32, %arg1: i32, %arg2: i32) -> (i32, i32) {
    %c0_i32 = arith.constant 0 : i32
    return %arg0, %arg1 : i32, i32
  }
}

</mosaic_0001>

<bundles_post_ra>
// kernel: custom_quantized_linear.1
= control target key start
LH: loop header
LB: loop body
LE: loop exit
PB: predicated region body
PF: predicated region fallthrough
CT: control target
= control target key end

     0   :  { %9 = vsyncpa [#allocation5], 0  ;;  %s249_s0 = inlined_call_operand.vmem [shape: f32[1,2], index: 0, kind: input, shape index: {}]   ;;  %s250_s1 = inlined_call_operand.vmem [shape: f32[8,32], index: 1, kind: input, shape index: {}]   ;;  %s251_s2 = inlined_call_operand.vmem [shape: s8[32,128], index: 2, kind: input, shape index: {}]   ;;  %s252_s3 = inlined_call_operand.vmem [shape: f32[1,128], index: 3, kind: input, shape index: {}]   ;;  %s253_s4 = inlined_call_operand.hbm [shape: f32[8,128], index: 4, kind: output, shape index: {}]  }
   0x1   :  { %10 = vsyncpa [#allocation4], 0  ;;  %s17_s17 = sshll.u32 %s249_s0, 4  ;;  %s18_s17 = int_to_ptr.vmem [resolvable:$true] %s17_s17 }
   0x2   :  { %s158_s18 = scalar_lea.vmem %s18_s17, 16  ;;  %p163_p1 = scmp.lt.s32.totalorder %s18_s17, %s18_s17 }
   0x3   :  { %p159_p0 = scmp.ne.s32.totalorder %s18_s17, %s158_s18  ;;  %p164_p2 = scmp.lt.s32.totalorder %s158_s18, %s158_s18 }
   0x5   :  { %p165_p3 = por %p164_p2, %p163_p1 }
   0x7   :  { %p166_p4 = pnand %p165_p3, %p159_p0 }
   0x9   :  { %169 = shalt.err (!%p166_p4)
}
   0xa   :  { %s196_s19 = smov [#allocation3]  }
   0xb   :  { %20 = dma.vmem_to_smem %s18_s17, 16, %s196_s19, [#allocation5]  }
   0xc   :  { %192 = dma.done.wait [#allocation5], 16  }
   0xd   :  { %193 = vsyncadd [#allocation5], 4294967280 }
   0xe   :  { %30 = sfence }
   0xf   :  { %v51_v0 = vld [vmem:[%s251_s2] sm:$0xff]  ;;  %s37_s22 = sld [smem:[#allocation3]]  ;;  %v197_v1 = vmov 0.0   ;;  %vm198_vm0 = vmmov 0   ;;  %vm57_vm1 = vcmask 261120   ;;  %s138_s2 = sld [smem:[#allocation3 + $0x1]] }
  0x10   :  { %143 = vmatprep.subr.bf16.mxu0 %v197_v1  ;;  %v54_v2 = vunpack.c.l.s8.bf16 %v51_v0  ;;  %147 = vmatprep.mubr.msk.bf16.mxu0 %vm198_vm0, %v197_v1  ;;  %v55_v3 = vunpack.c.h.s8.bf16 %v51_v0  ;;  %v38_v4 = vld [vmem:[%s250_s1] sm:$0xff]  ;;  %s199_s25 = smov [#allocation6]  }
  0x11   :  { %v139_v21 = vld [vmem:[%s252_s3] ss:$0 sm:$0xff]  ;;  %s127_s26 = sshll.u32 %s199_s25, 4  ;;  %s128_s26 = int_to_ptr.vmem [resolvable:$true] %s127_s26 }
  0x12   :  { %144 = vmatpush3.bf16.msra.mxu0 %v54_v2  ;;  %s170_s27 = scalar_lea.vmem %s128_s26, 128  ;;  %p175_p6 = scmp.lt.s32.totalorder %s128_s26, %s128_s26 }
  0x13   :  { %145 = vmatprep.subr.bf16.mxu0 %v197_v1  ;;  %p171_p5 = scmp.ne.s32.totalorder %s128_s26, %s170_s27  ;;  %p176_p7 = scmp.lt.s32.totalorder %s170_s27, %s170_s27 }
  0x15   :  { %v39_v5 = vstv %s37_s22  ;;  %v110_v19 = vstv %s138_s2  ;;  %p177_p8 = por %p176_p7, %p175_p6 }
  0x16   :  { %146 = vmatpush3.bf16.msra.mxu0 %v55_v3  ;;  %v40_v6 = vmul.f32 %v39_v5, %v38_v4 }
  0x17   :  { %p178_p9 = pnand %p177_p8, %p171_p5 }
  0x18   :  { %v151_v7 = vround.rtne.f32 %v40_v6 }
  0x1a   :  { %v136_v8 = vclamps-f32 %v151_v7, 127.0 }
  0x1c   :  { %v44_v9 = vtrunc.f32 %v136_v8 }
  0x1e   :  { %v45_v10 = vpack.c.f32.eXmY %v44_v9, %v44_v9, 312 }
  0x20   :  { %v49_v11 = vpack.c.b8 %v45_v10, %v45_v10 }
  0x22   :  { %v53_v12 = vunpack.c.l.s8.bf16 %v49_v11 }
  0x24   :  { %148 = vmatmul.mubr.msk.bf16.vlgmr.msra.gmra.mrb[0].mxu0 %vm57_vm1, %v53_v12 }
  0xf7   :  { %v95_v13 = vpop.f32.mrb[0].mxu0 }
  0xf8   :  { %v152_v14 = vtrunc.f32 %v95_v13  ;;  %v149_v15 = vpop.f32.mrb[1].mxu0 }
  0xf9   :  { %v98_v16 = vpop.f32.mrb[2].mxu0 }
  0xfa   :  { %v153_v17 = vcvt.f32.s32 %v152_v14  ;;  %v150_v18 = vpop.f32.mrb[3].mxu0 }
  0xfc   :  { %v109_v20 = vcvt.s32.f32 %v153_v17 }
  0xfe   :  { %v111_v22 = vmul.f32 %v110_v19, %v109_v20 }
 0x100   :  { %v119_v23 = vadd.f32 %v139_v21, %v111_v22 }
 0x102   :  { %120 = vst [vmem:[#allocation6] sm:$0xff] %v119_v23 }
 0x103   :  { %181 = shalt.err (!%p178_p9)
}
 0x104   :  { %s182_s30 = scalar_lea.hbm %s253_s4, 128 }
 0x105   :  { %p183_p10 = scmp.ne.s32.totalorder %s253_s4, %s182_s30  ;;  %p186_p11 = scmp.lt.u32.totalorder %s182_s30, %s253_s4 }
 0x107   :  { %p188_p12 = pnand %p186_p11, %p183_p10 }
 0x109   :  { %191 = shalt.err (!%p188_p12)
}
 0x10a   :  { %130 = dma.vmem_to_hbm [thread:$0]  %s128_s26, 128, %s253_s4, [#allocation4]  }
 0x10b   :  { %194 = dma.done.wait [#allocation4], 128  }
 0x10c   :  { %195 = vsyncadd [#allocation4], 4294967168 }
 0x10d   :  { %134 = vsyncpa [#allocation4], 1 }
 0x10e   :  { %135 = vsyncpa [#allocation5], 1 }

</bundles_post_ra>
